<compile_context>
chip_gen: v7x
topology: tpu7x:2x2x1
jax: 0.10.0
libtpu: 0.0.40
codegen_flags: <defaults>
</compile_context>

<pallas_src>
import functools

import jax
import jax.numpy as jnp
from jax.experimental import pallas as pl
from jax.experimental.pallas import tpu as pltpu


# ----------------------------------------------------------------------------
# Kernel 1: encoder + reparametrization + MLP + decoder hidden layer.
# Everything here is tiny (D0/D1-sized); it runs once, no grid.
# ----------------------------------------------------------------------------
def _encoder_mlp_kernel(hN,
                        h_ref,      # (B_pad, D0)  pooled embeddings (pre-scale)
                        scale_ref,  # (B_pad, 1)   1/Nitems ('mean') or 1.0 ('sum')
                        eps_ref,    # (B_pad, D1)  N(0,1) noise
                        mu_w_ref, mu_b_ref,    # (D0, D1), (1, D1)
                        lv_w_ref, lv_b_ref,    # (D0, D1), (1, D1)
                        mlp_w_ref, mlp_b_ref,  # (hN, D1, D1), (hN, 1, D1)
                        w1_w_ref, w1_b_ref,    # (D1, D0), (1, D0)
                        small_ref,  # (4, B_pad, D1) stacked [mu | logvar | z | z_t]
                        hd_ref):    # (B_pad, D0)  bf16 decoder hidden relu(w1(z_t))
    f32 = jnp.float32

    # encoder: h = relu( pooled * scale )
    h = jnp.maximum(h_ref[...] * scale_ref[...], 0.0)

    mu = jnp.dot(h, mu_w_ref[...], preferred_element_type=f32) + mu_b_ref[...]
    lv = jnp.dot(h, lv_w_ref[...], preferred_element_type=f32) + lv_b_ref[...]

    # reparametrize: z = mu + exp(0.5*logvar) * eps
    z = mu + jnp.exp(0.5 * lv) * eps_ref[...]

    # MLP: (hN - 1) x [Linear + ReLU] followed by a final Linear
    zt = z
    for i in range(hN - 1):
        zt = jnp.maximum(
            jnp.dot(zt, mlp_w_ref[i], preferred_element_type=f32) + mlp_b_ref[i],
            0.0)
    zt = jnp.dot(zt, mlp_w_ref[hN - 1], preferred_element_type=f32) + mlp_b_ref[hN - 1]

    # decoder hidden: relu(w1(z_t)) -- fed to the gridded decoder kernel
    hd = jnp.maximum(
        jnp.dot(zt, w1_w_ref[...], preferred_element_type=f32) + w1_b_ref[...], 0.0)

    # sublane-stacked small outputs: no cross-lane concatenate, no claim of
    # lane density (D1 < 128 lanes, so each store is a single small vst).
    small_ref[0, :, :] = mu
    small_ref[1, :, :] = lv
    small_ref[2, :, :] = z
    small_ref[3, :, :] = zt
    hd_ref[...] = hd.astype(hd_ref.dtype)


# ----------------------------------------------------------------------------
# Kernel 2: decoder projection xhat = hd @ inv_w + inv_b, tiled over Nsongs.
# ----------------------------------------------------------------------------
def _decoder_kernel(hd_ref,      # (B_pad, D0) bf16, VMEM-resident (constant map)
                    inv_w_ref,   # (D0, tN)    bf16 tile (double-buffered stream)
                    inv_b_ref,   # (1, tN)     f32 tile
                    xhat_ref):   # (B_pad, tN) output tile (f32 or bf16)
    acc = jnp.dot(hd_ref[...], inv_w_ref[...], preferred_element_type=jnp.float32)
    xhat_ref[...] = (acc + inv_b_ref[...]).astype(xhat_ref.dtype)


def _pick_tile_n(Nsongs, D0, B_pad, xhat_bytes=4,
                 budget_bytes=24 << 20, max_tile=32768, min_tiles=4):
    """Decoder N tile: largest multiple of 512 lanes whose double-buffered
    footprint (inv_w bf16 + inv_b f32 + xhat tiles) fits `budget_bytes`,
    hard-capped at `max_tile`, and capped so large Nsongs still gets at least
    `min_tiles` grid steps (keeps both v7x TensorCores busy with the
    "parallel" grid axis and leaves room to double-buffer).  The budget is
    sized for v7x's 64 MiB physical VMEM; v5e/v6e (128 MiB) have headroom."""
    lane_q = 512
    n_aligned = pl.cdiv(Nsongs, 128) * 128
    if n_aligned <= lane_q:
        return int(n_aligned)
    per_col = D0 * 2 + B_pad * xhat_bytes + 4       # bytes per output column, 1 buf
    by_budget = budget_bytes // (2 * per_col)       # 2x for double-buffering
    by_tiles = max(lane_q, (Nsongs // min_tiles) // lane_q * lane_q)
    tN = min(by_budget, by_tiles, max_tile)
    tN = max(lane_q, (tN // lane_q) * lane_q)
    return int(min(tN, n_aligned))


# ----------------------------------------------------------------------------
# Wrapper: reproduces model.forward(x) -> (xhat, [mu, logvar, z, z_t])
# ----------------------------------------------------------------------------
def vae_forward(x, params, eps, *, reduction_emb='mean', tile_n=None,
                xhat_dtype=jnp.float32):
    B, S = x.shape
    D0, D1 = params['mu_w'].shape
    Nsongs = params['inv_w'].shape[1]
    hN = params['mlp_w'].shape[0]
    f32 = jnp.float32

    # --- glue: embedding gather fused with pooling (no (B,S,D0) kernel input) ---
    idx = x + 1
    gathered = jnp.take(params['emb_w'], idx, axis=0).astype(f32)
    # padding_idx=0 / `emb.weight[0] = 0` semantics without copying the table:
    gathered = jnp.where((idx == 0)[..., None], 0.0, gathered)
    h_pool = gathered.sum(axis=1)                                   # (B, D0)

    if reduction_emb == 'sum':
        scale = jnp.ones((B, 1), f32)
    elif reduction_emb == 'mean':
        nitems = jnp.sum((x != 0).astype(f32), axis=1, keepdims=True)
        # guard against all-padding rows (original torch code would produce NaN)
        scale = 1.0 / jnp.maximum(nitems, 1.0)
    else:
        raise ValueError(reduction_emb)

    # --- pad batch to a multiple of 8 sublanes (and at least 8 rows) ---
    B_pad = max(8, ((B + 7) // 8) * 8)
    pad_b = B_pad - B
    if pad_b:
        h_pool = jnp.pad(h_pool, ((0, pad_b), (0, 0)))
        scale = jnp.pad(scale, ((0, pad_b), (0, 0)))
        eps = jnp.pad(eps, ((0, pad_b), (0, 0)))

    # ---------------- kernel 1: encoder + MLP + decoder hidden ----------------
    vmem = lambda: pl.BlockSpec(memory_space=pltpu.MemorySpace.VMEM)
    enc_inputs = [h_pool, scale, eps,
                  params['mu_w'], params['mu_b'],
                  params['lv_w'], params['lv_b'],
                  params['mlp_w'], params['mlp_b'],
                  params['w1_w'], params['w1_b']]
    small, hd = pl.pallas_call(
        functools.partial(_encoder_mlp_kernel, hN),
        out_shape=(jax.ShapeDtypeStruct((4, B_pad, D1), f32),
                   jax.ShapeDtypeStruct((B_pad, D0), jnp.bfloat16)),
        in_specs=[vmem() for _ in enc_inputs],
        out_specs=(vmem(), vmem()),
        cost_estimate=pl.CostEstimate(
            flops=2 * B_pad * (2 * D0 * D1 + hN * D1 * D1 + D1 * D0),
            transcendentals=B_pad * D1,
            bytes_accessed=4 * (2 * D0 * D1 + hN * D1 * (D1 + 1)
                                + D1 * D0 + D0 + B_pad * (2 * D0 + 6 * D1))),
    )(*enc_inputs)

    mu = small[0, :B]
    lv = small[1, :B]
    z = small[2, :B]
    zt = small[3, :B]

    # ---------------- kernel 2: gridded decoder over Nsongs ----------------
    xhat_bytes = jnp.dtype(xhat_dtype).itemsize
    tN = tile_n if tile_n is not None else _pick_tile_n(
        Nsongs, D0, B_pad, xhat_bytes=xhat_bytes)
    assert tN % 128 == 0, "decoder N tile must be a multiple of 128 lanes"
    num_tiles = pl.cdiv(Nsongs, tN)

    # No per-call jnp.pad of inv_w/inv_b: the ragged last tile is handled by
    # Pallas (out-of-bounds reads only feed out-of-bounds output columns,
    # which are masked on writeback).
    xhat_full = pl.pallas_call(
        _decoder_kernel,
        out_shape=jax.ShapeDtypeStruct((B_pad, Nsongs), xhat_dtype),
        grid=(num_tiles,),
        in_specs=[pl.BlockSpec((B_pad, D0), lambda n: (0, 0)),   # hd resident
                  pl.BlockSpec((D0, tN), lambda n: (0, n)),      # stream inv_w
                  pl.BlockSpec((1, tN), lambda n: (0, n))],      # stream inv_b
        out_specs=pl.BlockSpec((B_pad, tN), lambda n: (0, n)),
        compiler_params=pltpu.CompilerParams(
            dimension_semantics=("parallel",),      # both v7x TCs split tiles
            vmem_limit_bytes=40 * 1024 * 1024),     # < v7x 64 MiB physical VMEM
        cost_estimate=pl.CostEstimate(
            flops=2 * B_pad * D0 * Nsongs,
            transcendentals=0,
            bytes_accessed=(D0 * Nsongs * 2 + Nsongs * 4
                            + B_pad * Nsongs * xhat_bytes + B_pad * D0 * 2)),
    )(hd, params['inv_w'], params['inv_b'])

    xhat = xhat_full[:B]
    return xhat, [mu, lv, z, zt]


# ----------------------------------------------------------------------------
# Pure-JAX reference (for correctness check)
# ----------------------------------------------------------------------------
def vae_forward_ref(x, params, eps, *, reduction_emb='mean'):
    emb_w = params['emb_w'].astype(jnp.float32).at[0].set(0.0)
    h = jnp.take(emb_w, x + 1, axis=0).sum(axis=1)
    if reduction_emb == 'mean':
        nitems = jnp.maximum(
            jnp.sum((x != 0).astype(jnp.float32), axis=1, keepdims=True), 1.0)
        h = h / nitems
    h = jnp.maximum(h, 0.0)
    mu = h @ params['mu_w'] + params['mu_b'][0]
    lv = h @ params['lv_w'] + params['lv_b'][0]
    z = mu + jnp.exp(0.5 * lv) * eps
    zt = z
    hN = params['mlp_w'].shape[0]
    for i in range(hN - 1):
        zt = jnp.maximum(zt @ params['mlp_w'][i] + params['mlp_b'][i, 0], 0.0)
    zt = zt @ params['mlp_w'][hN - 1] + params['mlp_b'][hN - 1, 0]
    hd = jnp.maximum(zt @ params['w1_w'] + params['w1_b'][0], 0.0)
    xhat = jnp.dot(hd.astype(jnp.bfloat16), params['inv_w'],
                   preferred_element_type=jnp.float32) + params['inv_b'][0]
    return xhat, [mu, lv, z, zt]


# ----------------------------------------------------------------------------
# Parameter init (deterministic, synthetic)
# ----------------------------------------------------------------------------
def init_params(key, Nsongs, dim, hN):
    D0, D1 = dim
    keys = jax.random.split(key, 8)

    def w(k, shape, fan_in):
        bound = 1.0 / jnp.sqrt(fan_in)
        return jax.random.uniform(k, shape, jnp.float32, -bound, bound)

    emb_w = jax.random.normal(keys[0], (Nsongs + 1, D0), jnp.float32) * 0.1
    emb_w = emb_w.at[0].set(0.0)   # padding row zeroed once at creation

    params = {
        # bf16 storage for the HBM-bandwidth-heavy tensors (f32 accumulation)
        'emb_w': emb_w.astype(jnp.bfloat16),
        'mu_w':  w(keys[1], (D0, D1), D0),
        'mu_b':  jnp.zeros((1, D1), jnp.float32),        # mu.bias.data.fill_(0)
        'lv_w':  w(keys[2], (D0, D1), D0),
        'lv_b':  jnp.zeros((1, D1), jnp.float32),        # logvar.bias.data.fill_(0)
        'mlp_w': w(keys[3], (hN, D1, D1), D1),
        'mlp_b': w(keys[4], (hN, 1, D1), D1),
        'w1_w':  w(keys[5], (D1, D0), D1),
        'w1_b':  w(keys[6], (1, D0), D1),
        'inv_w': w(keys[7], (D0, Nsongs), D0).astype(jnp.bfloat16),
        # TODO(synk): original code loads inv.bias from
        # 'results/metadata/bias_inicialization'; using zeros instead.
        'inv_b': jnp.zeros((1, Nsongs), jnp.float32),
    }
    return params


if __name__ == "__main__":
    # Nsongs deliberately NOT a multiple of 128: exercises the ragged last
    # decoder tile path that replaced the per-call jnp.pad of inv_w/inv_b.
    Nsongs = 600
    dim = (32, 16)       # (D0, D1)
    hN = 3               # MLP: 2x(Linear+ReLU) + Linear
    B, S = 4, 8
    reduction_emb = 'mean'

    key = jax.random.PRNGKey(0)
    k_x, k_eps, k_p = jax.random.split(key, 3)

    # song indices in [0, Nsongs-1]; 0 is treated as padding in the 'mean' path
    x = jax.random.randint(k_x, (B, S), 0, Nsongs, dtype=jnp.int32)
    x = x.at[:, 0].set(jnp.maximum(x[:, 0], 1))   # guarantee >=1 non-pad item/row
    eps = jax.random.normal(k_eps, (B, dim[1]), jnp.float32)

    params = init_params(k_p, Nsongs, dim, hN)

    # pure-JAX reference
    xhat_r, (mu_r, lv_r, z_r, zt_r) = vae_forward_ref(
        x, params, eps, reduction_emb=reduction_emb)

    # (a) small explicit tile -> cdiv(600,128)=5 grid steps incl. one ragged tile
    xhat, (mu, lv, z, zt) = vae_forward(
        x, params, eps, reduction_emb=reduction_emb, tile_n=128)
    jax.block_until_ready(xhat)
    for a, b in [(xhat, xhat_r), (mu, mu_r), (lv, lv_r), (z, z_r), (zt, zt_r)]:
        assert a.shape == b.shape, "shape mismatch vs reference"
        assert jnp.allclose(a, b, atol=1e-3, rtol=1e-3), "mismatch vs reference"

    # (b) auto-picked tile (512 here -> 2 grid steps, ragged last tile)
    xhat2, _ = vae_forward(x, params, eps, reduction_emb=reduction_emb)
    jax.block_until_ready(xhat2)
    assert jnp.allclose(xhat2, xhat_r, atol=1e-3, rtol=1e-3), "auto-tile mismatch"

    print("KERNEL_OK")
</pallas_src>

<mosaic_0001>
module attributes {stable_mosaic.version = 11 : i64} {
  func.func @_encoder_mlp_kernel(%arg0: memref<8x32xf32, #tpu.memory_space<vmem>>, %arg1: memref<8x1xf32, #tpu.memory_space<vmem>>, %arg2: memref<8x16xf32, #tpu.memory_space<vmem>>, %arg3: memref<32x16xf32, #tpu.memory_space<vmem>>, %arg4: memref<1x16xf32, #tpu.memory_space<vmem>>, %arg5: memref<32x16xf32, #tpu.memory_space<vmem>>, %arg6: memref<1x16xf32, #tpu.memory_space<vmem>>, %arg7: memref<3x16x16xf32, #tpu.memory_space<vmem>>, %arg8: memref<3x1x16xf32, #tpu.memory_space<vmem>>, %arg9: memref<16x32xf32, #tpu.memory_space<vmem>>, %arg10: memref<1x32xf32, #tpu.memory_space<vmem>>, %arg11: memref<4x8x16xf32, #tpu.memory_space<vmem>>, %arg12: memref<8x32xbf16, #tpu.memory_space<vmem>>) attributes {dimension_semantics = [], scalar_prefetch = 0 : i64, scratch_operands = 0 : i64, tpu.core_type = #tpu.core_type<tc>} {
    %c0 = arith.constant 0 : index
    %c0_0 = arith.constant 0 : index
    %0 = vector.load %arg0[%c0, %c0_0] : memref<8x32xf32, #tpu.memory_space<vmem>>, vector<8x32xf32>
    %c0_1 = arith.constant 0 : index
    %c0_2 = arith.constant 0 : index
    %1 = vector.load %arg1[%c0_1, %c0_2] : memref<8x1xf32, #tpu.memory_space<vmem>>, vector<8x1xf32>
    %2 = vector.broadcast %1 : vector<8x1xf32> to vector<8x32xf32>
    %3 = arith.mulf %0, %2 : vector<8x32xf32>
    %cst = arith.constant 0.000000e+00 : f32
    %4 = vector.broadcast %cst : f32 to vector<8x32xf32>
    %5 = arith.maximumf %3, %4 : vector<8x32xf32>
    %c0_3 = arith.constant 0 : index
    %c0_4 = arith.constant 0 : index
    %6 = vector.load %arg3[%c0_3, %c0_4] : memref<32x16xf32, #tpu.memory_space<vmem>>, vector<32x16xf32>
    %cst_5 = arith.constant dense<0.000000e+00> : vector<8x16xf32>
    %7 = tpu.matmul %5, %6, %cst_5 {dimension_numbers = #tpu.dot_dimension_numbers<[1], [0], [0], [1], [0, 0, 1, 1], [], []>} : vector<8x32xf32>, vector<32x16xf32>, vector<8x16xf32> -> vector<8x16xf32>
    %c0_6 = arith.constant 0 : index
    %c0_7 = arith.constant 0 : index
    %8 = vector.load %arg4[%c0_6, %c0_7] : memref<1x16xf32, #tpu.memory_space<vmem>>, vector<1x16xf32>
    %9 = vector.broadcast %8 : vector<1x16xf32> to vector<8x16xf32>
    %10 = arith.addf %7, %9 : vector<8x16xf32>
    %c0_8 = arith.constant 0 : index
    %c0_9 = arith.constant 0 : index
    %11 = vector.load %arg5[%c0_8, %c0_9] : memref<32x16xf32, #tpu.memory_space<vmem>>, vector<32x16xf32>
    %cst_10 = arith.constant dense<0.000000e+00> : vector<8x16xf32>
    %12 = tpu.matmul %5, %11, %cst_10 {dimension_numbers = #tpu.dot_dimension_numbers<[1], [0], [0], [1], [0, 0, 1, 1], [], []>} : vector<8x32xf32>, vector<32x16xf32>, vector<8x16xf32> -> vector<8x16xf32>
    %c0_11 = arith.constant 0 : index
    %c0_12 = arith.constant 0 : index
    %13 = vector.load %arg6[%c0_11, %c0_12] : memref<1x16xf32, #tpu.memory_space<vmem>>, vector<1x16xf32>
    %14 = vector.broadcast %13 : vector<1x16xf32> to vector<8x16xf32>
    %15 = arith.addf %12, %14 : vector<8x16xf32>
    %cst_13 = arith.constant 5.000000e-01 : f32
    %16 = vector.broadcast %cst_13 : f32 to vector<8x16xf32>
    %17 = arith.mulf %16, %15 : vector<8x16xf32>
    %18 = math.exp %17 : vector<8x16xf32>
    %c0_14 = arith.constant 0 : index
    %c0_15 = arith.constant 0 : index
    %19 = vector.load %arg2[%c0_14, %c0_15] : memref<8x16xf32, #tpu.memory_space<vmem>>, vector<8x16xf32>
    %20 = arith.mulf %18, %19 : vector<8x16xf32>
    %21 = arith.addf %10, %20 : vector<8x16xf32>
    %c0_16 = arith.constant 0 : index
    %c0_17 = arith.constant 0 : index
    %c0_18 = arith.constant 0 : index
    %22 = vector.load %arg7[%c0_16, %c0_17, %c0_18] : memref<3x16x16xf32, #tpu.memory_space<vmem>>, vector<1x16x16xf32>
    %23 = vector.shape_cast %22 : vector<1x16x16xf32> to vector<16x16xf32>
    %cst_19 = arith.constant dense<0.000000e+00> : vector<8x16xf32>
    %24 = tpu.matmul %21, %23, %cst_19 {dimension_numbers = #tpu.dot_dimension_numbers<[1], [0], [0], [1], [0, 0, 1, 1], [], []>} : vector<8x16xf32>, vector<16x16xf32>, vector<8x16xf32> -> vector<8x16xf32>
    %c0_20 = arith.constant 0 : index
    %c0_21 = arith.constant 0 : index
    %c0_22 = arith.constant 0 : index
    %25 = vector.load %arg8[%c0_20, %c0_21, %c0_22] : memref<3x1x16xf32, #tpu.memory_space<vmem>>, vector<1x1x16xf32>
    %26 = vector.shape_cast %25 : vector<1x1x16xf32> to vector<1x16xf32>
    %27 = vector.broadcast %26 : vector<1x16xf32> to vector<8x16xf32>
    %28 = arith.addf %24, %27 : vector<8x16xf32>
    %cst_23 = arith.constant 0.000000e+00 : f32
    %29 = vector.broadcast %cst_23 : f32 to vector<8x16xf32>
    %30 = arith.maximumf %28, %29 : vector<8x16xf32>
    %c1 = arith.constant 1 : index
    %c0_24 = arith.constant 0 : index
    %c0_25 = arith.constant 0 : index
    %31 = vector.load %arg7[%c1, %c0_24, %c0_25] : memref<3x16x16xf32, #tpu.memory_space<vmem>>, vector<1x16x16xf32>
    %32 = vector.shape_cast %31 : vector<1x16x16xf32> to vector<16x16xf32>
    %cst_26 = arith.constant dense<0.000000e+00> : vector<8x16xf32>
    %33 = tpu.matmul %30, %32, %cst_26 {dimension_numbers = #tpu.dot_dimension_numbers<[1], [0], [0], [1], [0, 0, 1, 1], [], []>} : vector<8x16xf32>, vector<16x16xf32>, vector<8x16xf32> -> vector<8x16xf32>
    %c1_27 = arith.constant 1 : index
    %c0_28 = arith.constant 0 : index
    %c0_29 = arith.constant 0 : index
    %34 = vector.load %arg8[%c1_27, %c0_28, %c0_29] : memref<3x1x16xf32, #tpu.memory_space<vmem>>, vector<1x1x16xf32>
    %35 = vector.shape_cast %34 : vector<1x1x16xf32> to vector<1x16xf32>
    %36 = vector.broadcast %35 : vector<1x16xf32> to vector<8x16xf32>
    %37 = arith.addf %33, %36 : vector<8x16xf32>
    %cst_30 = arith.constant 0.000000e+00 : f32
    %38 = vector.broadcast %cst_30 : f32 to vector<8x16xf32>
    %39 = arith.maximumf %37, %38 : vector<8x16xf32>
    %c2 = arith.constant 2 : index
    %c0_31 = arith.constant 0 : index
    %c0_32 = arith.constant 0 : index
    %40 = vector.load %arg7[%c2, %c0_31, %c0_32] : memref<3x16x16xf32, #tpu.memory_space<vmem>>, vector<1x16x16xf32>
    %41 = vector.shape_cast %40 : vector<1x16x16xf32> to vector<16x16xf32>
    %cst_33 = arith.constant dense<0.000000e+00> : vector<8x16xf32>
    %42 = tpu.matmul %39, %41, %cst_33 {dimension_numbers = #tpu.dot_dimension_numbers<[1], [0], [0], [1], [0, 0, 1, 1], [], []>} : vector<8x16xf32>, vector<16x16xf32>, vector<8x16xf32> -> vector<8x16xf32>
    %c2_34 = arith.constant 2 : index
    %c0_35 = arith.constant 0 : index
    %c0_36 = arith.constant 0 : index
    %43 = vector.load %arg8[%c2_34, %c0_35, %c0_36] : memref<3x1x16xf32, #tpu.memory_space<vmem>>, vector<1x1x16xf32>
    %44 = vector.shape_cast %43 : vector<1x1x16xf32> to vector<1x16xf32>
    %45 = vector.broadcast %44 : vector<1x16xf32> to vector<8x16xf32>
    %46 = arith.addf %42, %45 : vector<8x16xf32>
    %c0_37 = arith.constant 0 : index
    %c0_38 = arith.constant 0 : index
    %47 = vector.load %arg9[%c0_37, %c0_38] : memref<16x32xf32, #tpu.memory_space<vmem>>, vector<16x32xf32>
    %cst_39 = arith.constant dense<0.000000e+00> : vector<8x32xf32>
    %48 = tpu.matmul %46, %47, %cst_39 {dimension_numbers = #tpu.dot_dimension_numbers<[1], [0], [0], [1], [0, 0, 1, 1], [], []>} : vector<8x16xf32>, vector<16x32xf32>, vector<8x32xf32> -> vector<8x32xf32>
    %c0_40 = arith.constant 0 : index
    %c0_41 = arith.constant 0 : index
    %49 = vector.load %arg10[%c0_40, %c0_41] : memref<1x32xf32, #tpu.memory_space<vmem>>, vector<1x32xf32>
    %50 = vector.broadcast %49 : vector<1x32xf32> to vector<8x32xf32>
    %51 = arith.addf %48, %50 : vector<8x32xf32>
    %cst_42 = arith.constant 0.000000e+00 : f32
    %52 = vector.broadcast %cst_42 : f32 to vector<8x32xf32>
    %53 = arith.maximumf %51, %52 : vector<8x32xf32>
    %c0_43 = arith.constant 0 : index
    %c0_44 = arith.constant 0 : index
    %c0_45 = arith.constant 0 : index
    %54 = vector.load %arg11[%c0_43, %c0_44, %c0_45] : memref<4x8x16xf32, #tpu.memory_space<vmem>>, vector<1x8x16xf32>
    %55 = vector.shape_cast %54 : vector<1x8x16xf32> to vector<8x16xf32>
    %56 = vector.shape_cast %10 : vector<8x16xf32> to vector<1x8x16xf32>
    tpu.vector_store %arg11[%c0_43, %c0_44, %c0_45], %56 {strides = array<i32>} : memref<4x8x16xf32, #tpu.memory_space<vmem>>, vector<1x8x16xf32>,
    %c1_46 = arith.constant 1 : index
    %c0_47 = arith.constant 0 : index
    %c0_48 = arith.constant 0 : index
    %57 = vector.load %arg11[%c1_46, %c0_47, %c0_48] : memref<4x8x16xf32, #tpu.memory_space<vmem>>, vector<1x8x16xf32>
    %58 = vector.shape_cast %57 : vector<1x8x16xf32> to vector<8x16xf32>
    %59 = vector.shape_cast %15 : vector<8x16xf32> to vector<1x8x16xf32>
    tpu.vector_store %arg11[%c1_46, %c0_47, %c0_48], %59 {strides = array<i32>} : memref<4x8x16xf32, #tpu.memory_space<vmem>>, vector<1x8x16xf32>,
    %c2_49 = arith.constant 2 : index
    %c0_50 = arith.constant 0 : index
    %c0_51 = arith.constant 0 : index
    %60 = vector.load %arg11[%c2_49, %c0_50, %c0_51] : memref<4x8x16xf32, #tpu.memory_space<vmem>>, vector<1x8x16xf32>
    %61 = vector.shape_cast %60 : vector<1x8x16xf32> to vector<8x16xf32>
    %62 = vector.shape_cast %21 : vector<8x16xf32> to vector<1x8x16xf32>
    tpu.vector_store %arg11[%c2_49, %c0_50, %c0_51], %62 {strides = array<i32>} : memref<4x8x16xf32, #tpu.memory_space<vmem>>, vector<1x8x16xf32>,
    %c3 = arith.constant 3 : index
    %c0_52 = arith.constant 0 : index
    %c0_53 = arith.constant 0 : index
    %63 = vector.load %arg11[%c3, %c0_52, %c0_53] : memref<4x8x16xf32, #tpu.memory_space<vmem>>, vector<1x8x16xf32>
    %64 = vector.shape_cast %63 : vector<1x8x16xf32> to vector<8x16xf32>
    %65 = vector.shape_cast %46 : vector<8x16xf32> to vector<1x8x16xf32>
    tpu.vector_store %arg11[%c3, %c0_52, %c0_53], %65 {strides = array<i32>} : memref<4x8x16xf32, #tpu.memory_space<vmem>>, vector<1x8x16xf32>,
    %66 = arith.truncf %53 : vector<8x32xf32> to vector<8x32xbf16>
    %c0_54 = arith.constant 0 : index
    %c0_55 = arith.constant 0 : index
    %67 = vector.load %arg12[%c0_54, %c0_55] : memref<8x32xbf16, #tpu.memory_space<vmem>>, vector<8x32xbf16>
    tpu.vector_store %arg12[%c0_54, %c0_55], %66 {strides = array<i32>} : memref<8x32xbf16, #tpu.memory_space<vmem>>, vector<8x32xbf16>,
    return
  }
}

</mosaic_0001>

<bundles_post_ra>
// kernel: tpu_custom_call.1
= control target key start
LH: loop header
LB: loop body
LE: loop exit
PB: predicated region body
PF: predicated region fallthrough
CT: control target
= control target key end

     0   :  { %18 = vsyncpa [#allocation3], 0  ;;  %v772_v3 = vmov 0   ;;  %v773_v4 = vmov 0.0|0.0   ;;  %s966_s0 = inlined_call_operand.vmem [shape: f32[8,32], index: 0, kind: input, shape index: {}]   ;;  %s967_s1 = inlined_call_operand.vmem [shape: f32[8,1], index: 1, kind: input, shape index: {}]   ;;  %s968_s2 = inlined_call_operand.vmem [shape: f32[8,16], index: 2, kind: input, shape index: {}]   ;;  %s969_s3 = inlined_call_operand.vmem [shape: f32[32,16], index: 3, kind: input, shape index: {}]   ;;  %s970_s4 = inlined_call_operand.vmem [shape: f32[1,16], index: 4, kind: input, shape index: {}]   ;;  %s971_s5 = inlined_call_operand.vmem [shape: f32[32,16], index: 5, kind: input, shape index: {}]   ;;  %s972_s6 = inlined_call_operand.vmem [shape: f32[1,16], index: 6, kind: input, shape index: {}]   ;;  %s973_s7 = inlined_call_operand.vmem [shape: f32[3,16,16], index: 7, kind: input, shape index: {}]   ;;  %s974_s8 = inlined_call_operand.vmem [shape: f32[3,1,16], index: 8, kind: input, shape index: {}]   ;;  %s975_s9 = inlined_call_operand.vmem [shape: f32[16,32], index: 9, kind: input, shape index: {}]   ;;  %s976_s10 = inlined_call_operand.vmem [shape: f32[1,32], index: 10, kind: input, shape index: {}]   ;;  %s977_s11 = inlined_call_operand.hbm [shape: f32[4,8,16], index: 11, kind: output, shape index: {0}]   ;;  %s978_s12 = inlined_call_operand.hbm [shape: bf16[8,32], index: 12, kind: output, shape index: {1}]  }
   0x1   :  { %v43_v0 = vld [vmem:[%s967_s1] sm:$0xff]  ;;  %v52_v2 = vld [vmem:[%s969_s3 + $0x8] sm:$0xff]  ;;  %721 = vset.pattern.permute.xlu0 %v772_v3  ;;  %689 = vmatprep.subr.bf16.mxu0 %v773_v4  ;;  %v53_v9 = vld [vmem:[%s969_s3 + $0x10] sm:$0xff] }
   0x2   :  { %v51_v1 = vld [vmem:[%s969_s3] sm:$0xff]  ;;  %v137_v7 = vld [vmem:[%s971_s5 + $0x8] sm:$0xff]  ;;  %46 = vperm.xlu0 %721, %v43_v0   ;;  %695 = vmatprep.subr.bf16.mxu1 %v773_v4  ;;  %v54_v10 = vld [vmem:[%s969_s3 + $0x18] sm:$0xff] }
   0x3   :  { %v690_v5 = vpack.c.bf16 %v52_v2, %v51_v1  ;;  %v136_v6 = vld [vmem:[%s971_s5] sm:$0xff]  ;;  %v138_v11 = vld [vmem:[%s971_s5 + $0x10] sm:$0xff]  ;;  %v693_v12 = vpack.c.bf16 %v54_v10, %v53_v9  ;;  %v139_v13 = vld [vmem:[%s971_s5 + $0x18] sm:$0xff] }
   0x4   :  { %v696_v8 = vpack.c.bf16 %v137_v7, %v136_v6 }
   0x5   :  { %691 = vmatpush3.bf16.msra.mxu0 %v690_v5 }
   0x6   :  { %19 = vsyncpa [#allocation5], 0  ;;  %697 = vmatpush3.bf16.msra.mxu1 %v696_v8  ;;  %692 = vmatprep.subr.bf16.mxu0 %v773_v4  ;;  %v699_v14 = vpack.c.bf16 %v139_v13, %v138_v11  ;;  %vm774_vm0 = vmmov 0   ;;  %v775_v15 = vmov 0.0   ;;  %v42_v16 = vld [vmem:[%s966_s0] sm:$0xff]  ;;  %vm62_vm1 = vcmask 261120  }
   0x7   :  { %698 = vmatprep.subr.bf16.mxu1 %v773_v4  ;;  %647 = vmatprep.mubr.msk.f32.mxu0 %vm774_vm0, %v775_v15  ;;  %v223_v20 = vld [vmem:[%s973_s7] sm:$0xff]  ;;  %v224_v21 = vld [vmem:[%s973_s7 + $0x8] sm:$0xff]  ;;  %vm232_vm2 = vcmask 130048   ;;  %v605_v37 = vld [vmem:[%s973_s7 + $0x10] sm:$0xff] }
   0x8   :  { %658 = vmatprep.mubr.msk.f32.mxu1 %vm774_vm0, %v775_v15  ;;  %v702_v22 = vpack.c.bf16 %v224_v21, %v223_v20  ;;  %v599_v23 = vld [vmem:[%s970_s4] ss:$0 sm:$0xff]  ;;  %v606_v38 = vld [vmem:[%s973_s7 + $0x18] sm:$0xff]  ;;  %v611_v46 = vld [vmem:[%s973_s7 + $0x28] sm:$0xff] }
   0x9   :  { %694 = vmatpush3.bf16.msra.mxu0 %v693_v12  ;;  %v601_v24 = vld [vmem:[%s972_s6] ss:$0 sm:$0xff]  ;;  %v705_v39 = vpack.c.bf16 %v606_v38, %v605_v37  ;;  %v477_v49 = vld [vmem:[%s975_s9 + $0x8] sm:$0xff]  ;;  %v608_v51 = vld [vmem:[%s974_s8 + $0x1] ss:$0 sm:$0xff] }
   0xa   :  { %700 = vmatpush3.bf16.msra.mxu1 %v699_v14  ;;  %701 = vmatprep.subr.bf16.mxu0 %v773_v4  ;;  %v220_v33 = vld [vmem:[%s968_s2] sm:$0xff] }
   0xb   :  { %704 = vmatprep.subr.bf16.mxu1 %v773_v4  ;;  %v603_v40 = vld [vmem:[%s974_s8] ss:$0 sm:$0xff]  ;;  %v613_v56 = vld [vmem:[%s974_s8 + $0x2] ss:$0 sm:$0xff] }
   0xc   :  { %v610_v45 = vld [vmem:[%s973_s7 + $0x20] sm:$0xff] }
   0xd   :  { %v708_v47 = vpack.c.bf16 %v611_v46, %v610_v45  ;;  %v476_v48 = vld [vmem:[%s975_s9] sm:$0xff]  ;;  %s776_s9 = smov [#allocation2]  }
   0xe   :  { %v711_v50 = vpack.c.bf16 %v477_v49, %v476_v48  ;;  %s574_s22 = sshll.u32 %s776_s9, 4  ;;  %s575_s22 = int_to_ptr.vmem [resolvable:$true] %s574_s22 }
   0xf   :  { %s724_s23 = scalar_lea.vmem %s575_s22, 512  ;;  %p729_p1 = scmp.lt.s32.totalorder %s575_s22, %s575_s22 }
  0x10   :  { %p725_p0 = scmp.ne.s32.totalorder %s575_s22, %s724_s23  ;;  %p730_p2 = scmp.lt.s32.totalorder %s724_s23, %s724_s23 }
  0x12   :  { %p731_p3 = por %p730_p2, %p729_p1 }
  0x14   :  { %p732_p4 = pnand %p731_p3, %p725_p0 }
  0x81   :  { %v47_v17 = vpop.permute.xlu0 %46 }
  0x82   :  { %v49_v18 = vmul.f32 %v47_v17, %v42_v16 }
  0x84   :  { %v50_v19 = vmax.f32 %v49_v18, 0.0 }
  0x86   :  { %648 = vmatmul.mubr.msk.f32.vlgmr.msra.gmra.mrb[0].mxu0 %vm62_vm1, %v50_v19  ;;  %659 = vmatmul.mubr.msk.f32.vlgmr.msra.gmra.mrb[0].mxu1 %vm62_vm1, %v50_v19 }
  0x87   :  { %665 = vmatprep.mubr.msk.f32.mxu0 %vm774_vm0, %v775_v15  ;;  %672 = vmatprep.mubr.msk.f32.mxu1 %vm774_vm0, %v775_v15 }
  0x88   :  { %703 = vmatpush3.bf16.msra.mxu0 %v702_v22  ;;  %706 = vmatpush3.bf16.msra.mxu1 %v705_v39 }
  0x89   :  { %707 = vmatprep.subr.bf16.mxu0 %v773_v4  ;;  %710 = vmatprep.subr.bf16.mxu1 %v773_v4 }
 0x159   :  { %v132_v25 = vpop.f32.mrb[0].mxu0  ;;  %v213_v26 = vpop.f32.mrb[0].mxu1 }
 0x15a   :  { %v133_v27 = vadd.f32 %v599_v23, %v132_v25  ;;  %v214_v28 = vadd.f32 %v601_v24, %v213_v26  ;;  %v649_v29 = vpop.f32.mrb[1].mxu0  ;;  %v660_v30 = vpop.f32.mrb[1].mxu1 }
 0x15c   :  { %559 = vst.msk [vmem:[#allocation2] sm:$0xff] %vm232_vm2, %v133_v27  ;;  %v217_v31 = vmul.f32 0.5, %v214_v28  ;;  %561 = vst.msk [vmem:[#allocation2 + $0x8] sm:$0xff] %vm232_vm2, %v214_v28 }
 0x15e   :  { %v218_v32 = vmul.f32 1.442695, %v217_v31 }
 0x160   :  { %722 = vpow2.f32 %v218_v32 }
 0x16a   :  { %v723_v34 = vpop.eup %722 }
 0x16b   :  { %v221_v35 = vmul.f32 %v723_v34, %v220_v33 }
 0x16d   :  { %v222_v36 = vadd.f32 %v221_v35, %v133_v27 }
 0x16f   :  { %666 = vmatmul.mubr.msk.f32.vlgmr.msra.gmra.mrb[2].mxu0 %vm232_vm2, %v222_v36  ;;  %563 = vst.msk [vmem:[#allocation2 + $0x10] sm:$0xff] %vm232_vm2, %v222_v36 }
 0x170   :  { %679 = vmatprep.mubr.msk.f32.mxu0 %vm774_vm0, %v775_v15  ;;  %709 = vmatpush3.bf16.msra.mxu0 %v708_v47 }
 0x242   :  { %v302_v41 = vpop.f32.mrb[2].mxu0 }
 0x243   :  { %v303_v42 = vadd.f32 %v603_v40, %v302_v41  ;;  %v667_v43 = vpop.f32.mrb[3].mxu0 }
 0x245   :  { %v306_v44 = vmax.f32 %v303_v42, 0.0 }
 0x247   :  { %673 = vmatmul.mubr.msk.f32.vlgmr.msra.gmra.mrb[2].mxu1 %vm232_vm2, %v306_v44 }
 0x248   :  { %686 = vmatprep.mubr.msk.f32.mxu1 %vm774_vm0, %v775_v15  ;;  %712 = vmatpush3.bf16.msra.mxu1 %v711_v50 }
 0x31a   :  { %v387_v52 = vpop.f32.mrb[2].mxu1 }
 0x31b   :  { %v388_v53 = vadd.f32 %v608_v51, %v387_v52  ;;  %v674_v54 = vpop.f32.mrb[3].mxu1 }
 0x31d   :  { %v391_v55 = vmax.f32 %v388_v53, 0.0 }
 0x31f   :  { %680 = vmatmul.mubr.msk.f32.vlgmr.msra.gmra.mrb[4].mxu0 %vm232_vm2, %v391_v55 }
 0x3f2   :  { %v472_v57 = vpop.f32.mrb[4].mxu0 }
 0x3f3   :  { %v473_v58 = vadd.f32 %v613_v56, %v472_v57  ;;  %v681_v59 = vpop.f32.mrb[5].mxu0 }
 0x3f5   :  { %565 = vst.msk [vmem:[#allocation2 + $0x18] sm:$0xff] %vm232_vm2, %v473_v58  ;;  %687 = vmatmul.mubr.msk.f32.vlgmr.msra.gmra.mrb[4].mxu1 %vm232_vm2, %v473_v58 }
 0x3f6   :  { %735 = shalt.err (!%p732_p4)
}
 0x3f7   :  { %s736_s8 = scalar_lea.hbm %s977_s11, 512 }
 0x3f8   :  { %p737_p5 = scmp.ne.s32.totalorder %s977_s11, %s736_s8  ;;  %p740_p6 = scmp.lt.u32.totalorder %s736_s8, %s977_s11 }
 0x3fa   :  { %p742_p7 = pnand %p740_p6, %p737_p5 }
 0x3fc   :  { %745 = shalt.err (!%p742_p7)
}
 0x3fd   :  { %s777_s6 = smov 128   ;;  %s778_s28 = smov 8   ;;  %v615_v60 = vld [vmem:[%s976_s10] ss:$0 sm:$0xff]  ;;  %vm567_vm3 = vcmask 257024  }
 0x3fe   :  { %580 = dma.vmem_to_hbm [thread:$0]  %s575_s22, 512, %s977_s11, [#allocation3], %s777_s6, %s777_s6, %s778_s28  }
 0x3ff   :  { %s779_s13 = smov [#allocation4]  }
 0x400   :  { %s587_s14 = sshll.u32 %s779_s13, 4  ;;  %s588_s14 = int_to_ptr.vmem [resolvable:$true] %s587_s14 }
 0x401   :  { %s746_s15 = scalar_lea.vmem %s588_s14, 64  ;;  %p751_p9 = scmp.lt.s32.totalorder %s588_s14, %s588_s14 }
 0x402   :  { %p747_p8 = scmp.ne.s32.totalorder %s588_s14, %s746_s15  ;;  %p752_p10 = scmp.lt.s32.totalorder %s746_s15, %s746_s15 }
 0x404   :  { %p753_p11 = por %p752_p10, %p751_p9 }
 0x406   :  { %p754_p12 = pnand %p753_p11, %p747_p8 }
 0x4c8   :  { %v554_v61 = vpop.f32.mrb[4].mxu1 }
 0x4c9   :  { %v555_v62 = vadd.f32 %v615_v60, %v554_v61  ;;  %v688_v63 = vpop.f32.mrb[5].mxu1 }
 0x4cb   :  { %v558_v0 = vmax.f32 %v555_v62, 0.0 }
 0x4cd   :  { %v566_v1 = vpack.c.bf16 %v558_v0, %v558_v0 }
 0x4cf   :  { %568 = vst.msk [vmem:[#allocation4] sm:$0xf] %vm567_vm3, %v566_v1 }
 0x4d0   :  { %757 = shalt.err (!%p754_p12)
}
 0x4d1   :  { %s758_s10 = scalar_lea.hbm %s978_s12, 64 }
 0x4d2   :  { %p759_p13 = scmp.ne.s32.totalorder %s978_s12, %s758_s10  ;;  %p762_p0 = scmp.lt.u32.totalorder %s758_s10, %s978_s12 }
 0x4d4   :  { %p764_p1 = pnand %p762_p0, %p759_p13 }
 0x4d6   :  { %767 = shalt.err (!%p764_p1)
}
 0x4d7   :  { %590 = dma.vmem_to_hbm [thread:$0]  %s588_s14, 64, %s978_s12, [#allocation5]  }
 0x4d8   :  { %768 = dma.done.wait [#allocation3], 512  }
 0x4d9   :  { %769 = vsyncadd [#allocation3], 4294966784 }
 0x4da   :  { %770 = dma.done.wait [#allocation5], 64  }
 0x4db   :  { %771 = vsyncadd [#allocation5], 4294967232 }
 0x4dc   :  { %597 = vsyncpa [#allocation3], 1 }
 0x4dd   :  { %598 = vsyncpa [#allocation5], 1 }

</bundles_post_ra>
